<compile_context>
chip_gen: v7x
topology: tpu7x:2x2x1
jax: 0.10.0
libtpu: 0.0.40
codegen_flags: <defaults>
</compile_context>

<pallas_src>
import math

import jax
import jax.numpy as jnp
from jax import lax
from jax.experimental import pallas as pl
from jax.experimental.pallas import tpu as pltpu

_VMEM_LIMIT = 32 * 1024 * 1024   # fits scoped budgets on v5e / v6e / v7x
_NEG_INF = -1.0e30               # finite "-inf": keeps online softmax NaN-free


def _pick_tile(dim, target, align):
    """Largest tile <= target that divides `dim` and is a multiple of `align`.
    Falls back to the full dim (always a legal TPU block shape)."""
    if dim <= target:
        return dim
    t = (target // align) * align
    while t >= align:
        if dim % t == 0:
            return t
        t -= align
    return dim


# ---------------------------------------------------------------------------
# Kernel 1/2: tiled dense linear  out = x @ W + b   (QKV and output proj)
# ---------------------------------------------------------------------------
def _linear_kernel(x_ref, w_ref, b_ref, o_ref, acc_ref):
    @pl.when(pl.program_id(2) == 0)
    def _init():
        acc_ref[...] = jnp.zeros_like(acc_ref)

    acc_ref[...] += jnp.dot(
        x_ref[...].astype(jnp.bfloat16),
        w_ref[...].astype(jnp.bfloat16),
        preferred_element_type=jnp.float32,
    )

    @pl.when(pl.program_id(2) == pl.num_programs(2) - 1)
    def _store():
        o_ref[...] = (acc_ref[...] + b_ref[...].astype(jnp.float32)).astype(o_ref.dtype)


def pallas_linear(x2d, w, b, *, tm=256, tn=256, tk=512):
    """x2d: (M, K) @ w: (K, N) + b: (N,) -> (M, N), tiled with a K-axis accumulator."""
    M, K = x2d.shape
    K2, N = w.shape
    assert K == K2
    tm = _pick_tile(M, tm, 8)      # out second-minor: mult of 8 or full
    tn = _pick_tile(N, tn, 128)    # out/w minor: mult of 128 or full
    tk = _pick_tile(K, tk, 128)    # x minor: mult of 128 or full
    b2d = b.reshape(1, N)
    return pl.pallas_call(
        _linear_kernel,
        out_shape=jax.ShapeDtypeStruct((M, N), x2d.dtype),
        grid=(M // tm, N // tn, K // tk),
        in_specs=[
            pl.BlockSpec((tm, tk), lambda i, j, k: (i, k)),
            pl.BlockSpec((tk, tn), lambda i, j, k: (k, j)),
            pl.BlockSpec((1, tn), lambda i, j, k: (0, j)),
        ],
        out_specs=pl.BlockSpec((tm, tn), lambda i, j, k: (i, j)),
        scratch_shapes=[pltpu.VMEM((tm, tn), jnp.float32)],
        compiler_params=pltpu.CompilerParams(
            dimension_semantics=("parallel", "parallel", "arbitrary"),
            vmem_limit_bytes=_VMEM_LIMIT,
        ),
    )(x2d, w, b2d)


# ---------------------------------------------------------------------------
# Kernel 2/2: flash-style attention, fused QKV split, output in (B, L, C)
#   grid = (B, L//TQ, L//TKV); all H heads handled per grid step.
# ---------------------------------------------------------------------------
def _make_attention_kernel(num_heads, head_dim, scale):
    H, D = num_heads, head_dim

    def kernel(q_ref, k_ref, v_ref, bias_ref, o_ref, m_sc, l_sc, acc_sc):
        ki = pl.program_id(2)

        @pl.when(ki == 0)
        def _init():
            m_sc[...] = jnp.full(m_sc.shape, _NEG_INF, m_sc.dtype)
            l_sc[...] = jnp.zeros(l_sc.shape, l_sc.dtype)
            acc_sc[...] = jnp.zeros(acc_sc.shape, acc_sc.dtype)

        bias = bias_ref[...].astype(jnp.float32)                    # (TQ, TKV)

        # Static unroll over heads; all heads share the same q/k/v DMA tiles.
        for h in range(H):
            q_h = q_ref[0, :, 0, h, :].astype(jnp.bfloat16)         # (TQ, D)
            k_h = k_ref[0, :, 0, h, :].astype(jnp.bfloat16)         # (TKV, D)
            v_h = v_ref[0, :, 0, h, :].astype(jnp.bfloat16)         # (TKV, D)

            # s = (q*scale) @ k^T + bias, f32 accumulation on the MXU
            s = lax.dot_general(q_h, k_h, (((1,), (1,)), ((), ())),
                                preferred_element_type=jnp.float32)  # (TQ, TKV)
            s = s * scale + bias

            m_prev = m_sc[h]                                         # (TQ, 1)
            m_new = jnp.maximum(m_prev, jnp.max(s, axis=-1, keepdims=True))
            alpha = jnp.exp(m_prev - m_new)
            p = jnp.exp(s - m_new)                                   # (TQ, TKV) f32
            l_sc[h] = alpha * l_sc[h] + jnp.sum(p, axis=-1, keepdims=True)
            pv = jnp.dot(p.astype(jnp.bfloat16), v_h,
                         preferred_element_type=jnp.float32)         # (TQ, D)
            acc_sc[h] = alpha * acc_sc[h] + pv
            m_sc[h] = m_new

        @pl.when(ki == pl.num_programs(2) - 1)
        def _finalize():
            for h in range(H):
                inv_l = pl.reciprocal(l_sc[h], approx=True)          # (TQ, 1)
                o_ref[0, :, h * D:(h + 1) * D] = (acc_sc[h] * inv_l).astype(o_ref.dtype)

    return kernel


def pallas_attention(qkv5, attn_bias, scale, *, tq=128, tkv=256):
    """qkv5: (B, L, 3, H, D) packed QKV; attn_bias: (L, L). Returns (B, L, H*D)."""
    B, L, _three, H, D = qkv5.shape
    C = H * D
    tq = _pick_tile(L, tq, 8)       # bias block second-minor: mult of 8 (or full L)
    tkv = _pick_tile(L, tkv, 128)   # bias block minor: mult of 128 (or full L)

    q_spec = pl.BlockSpec((1, tq, 1, H, D), lambda b, qi, ki: (b, qi, 0, 0, 0))
    k_spec = pl.BlockSpec((1, tkv, 1, H, D), lambda b, qi, ki: (b, ki, 1, 0, 0))
    v_spec = pl.BlockSpec((1, tkv, 1, H, D), lambda b, qi, ki: (b, ki, 2, 0, 0))
    bias_spec = pl.BlockSpec((tq, tkv), lambda b, qi, ki: (qi, ki))
    out_spec = pl.BlockSpec((1, tq, C), lambda b, qi, ki: (b, qi, 0))

    return pl.pallas_call(
        _make_attention_kernel(H, D, scale),
        out_shape=jax.ShapeDtypeStruct((B, L, C), qkv5.dtype),
        grid=(B, L // tq, L // tkv),
        in_specs=[q_spec, k_spec, v_spec, bias_spec],
        out_specs=out_spec,
        scratch_shapes=[
            pltpu.VMEM((H, tq, 1), jnp.float32),   # running max
            pltpu.VMEM((H, tq, 1), jnp.float32),   # running denominator
            pltpu.VMEM((H, tq, D), jnp.float32),   # output accumulator
        ],
        compiler_params=pltpu.CompilerParams(
            dimension_semantics=("parallel", "parallel", "arbitrary"),
            vmem_limit_bytes=_VMEM_LIMIT,
        ),
    )(qkv5, qkv5, qkv5, attn_bias)


# ---------------------------------------------------------------------------
# Full SelfAttention forward
# ---------------------------------------------------------------------------
def self_attention_forward(x, attn_bias, params, num_heads):
    B, L, C = x.shape
    assert C % num_heads == 0
    D = C // num_heads
    scale = 0.25 / math.sqrt(D)   # module's attn_l2_norm=False scale

    # qkv projection: Linear(C, 3C, bias=False) then add cat(q_bias, 0, v_bias)
    qkv_bias = jnp.concatenate(
        [params["q_bias"], jnp.zeros((C,), params["q_bias"].dtype), params["v_bias"]]
    )
    pre_qkv = pallas_linear(x.reshape(B * L, C), params["w_qkv"], qkv_bias)

    # Free reshape only (no transpose): the head split is fused into the
    # attention BlockSpecs, and the attention output comes back in (B, L, C).
    qkv5 = pre_qkv.reshape(B, L, 3, num_heads, D)
    oup = pallas_attention(qkv5, attn_bias, scale)                 # (B, L, C)

    out = pallas_linear(oup.reshape(B * L, C), params["w_proj"], params["b_proj"])
    return out.reshape(B, L, C)


# ---------------------------------------------------------------------------
# Pure-JAX (f32) reference for a sanity check
# ---------------------------------------------------------------------------
def reference_forward(x, attn_bias, params, num_heads):
    B, L, C = x.shape
    D = C // num_heads
    scale = 0.25 / math.sqrt(D)
    qkv_bias = jnp.concatenate(
        [params["q_bias"], jnp.zeros((C,), x.dtype), params["v_bias"]]
    )
    pre_qkv = x.reshape(B * L, C) @ params["w_qkv"] + qkv_bias
    qkv = pre_qkv.reshape(B, L, 3, num_heads, D)
    q = jnp.transpose(qkv[:, :, 0], (0, 2, 1, 3))
    k = jnp.transpose(qkv[:, :, 1], (0, 2, 1, 3))
    v = jnp.transpose(qkv[:, :, 2], (0, 2, 1, 3))
    s = jnp.einsum("bhqd,bhkd->bhqk", q * scale, k) + attn_bias[None, None]
    p = jax.nn.softmax(s, axis=-1)
    o = jnp.einsum("bhqk,bhkd->bhqd", p, v)
    oup = jnp.transpose(o, (0, 2, 1, 3)).reshape(B, L, C)
    return (oup.reshape(B * L, C) @ params["w_proj"] + params["b_proj"]).reshape(
        B, L, C
    )


if __name__ == "__main__":
    # embed_dim=128, num_heads=4 -> head_dim=32; L=384 gives a 3x3 (q,kv) block
    # grid so the online-softmax accumulation path is actually exercised.
    B, L, C, H = 2, 384, 128, 4

    key = jax.random.PRNGKey(0)
    k_x, k_bias, k_wqkv, k_wproj, k_bproj, k_qb, k_vb = jax.random.split(key, 7)

    x = jax.random.normal(k_x, (B, L, C), jnp.float32)
    attn_bias = jax.random.normal(k_bias, (L, L), jnp.float32)

    params = {
        # stored as (in, out) = W^T of the PyTorch nn.Linear weight
        "w_qkv": 0.02 * jax.random.normal(k_wqkv, (C, 3 * C), jnp.float32),
        "q_bias": 0.02 * jax.random.normal(k_qb, (C,), jnp.float32),
        "v_bias": 0.02 * jax.random.normal(k_vb, (C,), jnp.float32),
        "w_proj": 0.02 * jax.random.normal(k_wproj, (C, C), jnp.float32),
        "b_proj": 0.02 * jax.random.normal(k_bproj, (C,), jnp.float32),
    }

    out = self_attention_forward(x, attn_bias, params, num_heads=H)
    out = jax.block_until_ready(out)

    ref = reference_forward(x, attn_bias, params, num_heads=H)
    assert out.shape == (B, L, C)
    max_err = float(jnp.max(jnp.abs(out - ref)))
    # bf16 MXU operands + approx reciprocal => slightly looser tolerance than f32
    assert jnp.allclose(out, ref, atol=2e-2, rtol=2e-2), f"mismatch vs reference: {max_err}"

    print("KERNEL_OK")
</pallas_src>

<mosaic_0001>
module attributes {stable_mosaic.version = 11 : i64} {
  func.func @_linear_kernel(%arg0: i32, %arg1: i32, %arg2: i32, %arg3: memref<256x128xf32, #tpu.memory_space<vmem>>, %arg4: memref<128x128xf32, #tpu.memory_space<vmem>>, %arg5: memref<1x128xf32, #tpu.memory_space<vmem>>, %arg6: memref<256x128xf32, #tpu.memory_space<vmem>>, %arg7: memref<256x128xf32, #tpu.memory_space<vmem>>) attributes {dimension_semantics = [#tpu.dimension_semantics<parallel>, #tpu.dimension_semantics<parallel>, #tpu.dimension_semantics<arbitrary>], iteration_bounds = array<i64: 3, 3, 1>, scalar_prefetch = 0 : i64, scratch_operands = 1 : i64, tpu.core_type = #tpu.core_type<tc>, window_params = [{transform_indices = @transform_0, window_bounds = array<i64: 256, 128>}, {transform_indices = @transform_1, window_bounds = array<i64: 128, 128>}, {transform_indices = @transform_2, window_bounds = array<i64: 1, 128>}, {transform_indices = @transform_3, window_bounds = array<i64: 256, 128>}]} {
    %c0_i32 = arith.constant 0 : i32
    %0 = arith.cmpi eq, %arg2, %c0_i32 : i32
    %1 = arith.extui %0 : i1 to i32
    %c0_i32_0 = arith.constant 0 : i32
    %2 = arith.cmpi ne, %1, %c0_i32_0 : i32
    scf.if %2 {
      %cst_10 = arith.constant 0.000000e+00 : f32
      %14 = vector.broadcast %cst_10 : f32 to vector<256x128xf32>
      %c0_11 = arith.constant 0 : index
      %c0_12 = arith.constant 0 : index
      %15 = vector.load %arg7[%c0_11, %c0_12] : memref<256x128xf32, #tpu.memory_space<vmem>>, vector<256x128xf32>
      tpu.vector_store %arg7[%c0_11, %c0_12], %14 {strides = array<i32>} : memref<256x128xf32, #tpu.memory_space<vmem>>, vector<256x128xf32>,
    } else {
    }
    %c0 = arith.constant 0 : index
    %c0_1 = arith.constant 0 : index
    %3 = vector.load %arg7[%c0, %c0_1] : memref<256x128xf32, #tpu.memory_space<vmem>>, vector<256x128xf32>
    %c0_2 = arith.constant 0 : index
    %c0_3 = arith.constant 0 : index
    %4 = vector.load %arg3[%c0_2, %c0_3] : memref<256x128xf32, #tpu.memory_space<vmem>>, vector<256x128xf32>
    %5 = arith.truncf %4 : vector<256x128xf32> to vector<256x128xbf16>
    %c0_4 = arith.constant 0 : index
    %c0_5 = arith.constant 0 : index
    %6 = vector.load %arg4[%c0_4, %c0_5] : memref<128x128xf32, #tpu.memory_space<vmem>>, vector<128x128xf32>
    %7 = arith.truncf %6 : vector<128x128xf32> to vector<128x128xbf16>
    %cst = arith.constant dense<0.000000e+00> : vector<256x128xf32>
    %8 = tpu.matmul %5, %7, %cst {dimension_numbers = #tpu.dot_dimension_numbers<[1], [0], [0], [1], [0, 0, 1, 1], [], []>} : vector<256x128xbf16>, vector<128x128xbf16>, vector<256x128xf32> -> vector<256x128xf32>
    %9 = arith.addf %3, %8 : vector<256x128xf32>
    %c0_6 = arith.constant 0 : index
    %c0_7 = arith.constant 0 : index
    %10 = vector.load %arg7[%c0_6, %c0_7] : memref<256x128xf32, #tpu.memory_space<vmem>>, vector<256x128xf32>
    tpu.vector_store %arg7[%c0_6, %c0_7], %9 {strides = array<i32>} : memref<256x128xf32, #tpu.memory_space<vmem>>, vector<256x128xf32>,
    %c0_i32_8 = arith.constant 0 : i32
    %11 = arith.cmpi eq, %arg2, %c0_i32_8 : i32
    %12 = arith.extui %11 : i1 to i32
    %c0_i32_9 = arith.constant 0 : i32
    %13 = arith.cmpi ne, %12, %c0_i32_9 : i32
    scf.if %13 {
      %c0_10 = arith.constant 0 : index
      %c0_11 = arith.constant 0 : index
      %14 = vector.load %arg7[%c0_10, %c0_11] : memref<256x128xf32, #tpu.memory_space<vmem>>, vector<256x128xf32>
      %c0_12 = arith.constant 0 : index
      %c0_13 = arith.constant 0 : index
      %15 = vector.load %arg5[%c0_12, %c0_13] : memref<1x128xf32, #tpu.memory_space<vmem>>, vector<1x128xf32>
      %16 = vector.broadcast %15 : vector<1x128xf32> to vector<256x128xf32>
      %17 = arith.addf %14, %16 : vector<256x128xf32>
      %c0_14 = arith.constant 0 : index
      %c0_15 = arith.constant 0 : index
      %18 = vector.load %arg6[%c0_14, %c0_15] : memref<256x128xf32, #tpu.memory_space<vmem>>, vector<256x128xf32>
      tpu.vector_store %arg6[%c0_14, %c0_15], %17 {strides = array<i32>} : memref<256x128xf32, #tpu.memory_space<vmem>>, vector<256x128xf32>,
    } else {
    }
    return
  }
  func.func @transform_0(%arg0: i32, %arg1: i32, %arg2: i32) -> (i32, i32) {
    %c0_i32 = arith.constant 0 : i32
    return %arg0, %arg2 : i32, i32
  }
  func.func @transform_1(%arg0: i32, %arg1: i32, %arg2: i32) -> (i32, i32) {
    %c0_i32 = arith.constant 0 : i32
    return %arg2, %arg1 : i32, i32
  }
  func.func @transform_2(%arg0: i32, %arg1: i32, %arg2: i32) -> (i32, i32) {
    %c0_i32 = arith.constant 0 : i32
    %c0_i32_0 = arith.constant 0 : i32
    return %c0_i32, %arg1 : i32, i32
  }
  func.func @transform_3(%arg0: i32, %arg1: i32, %arg2: i32) -> (i32, i32) {
    %c0_i32 = arith.constant 0 : i32
    return %arg0, %arg1 : i32, i32
  }
}

</mosaic_0001>

<bundles_post_ra>
// kernel: tpu_custom_call.1
= control target key start
LH: loop header
LB: loop body
LE: loop exit
PB: predicated region body
PF: predicated region fallthrough
CT: control target
= control target key end

     0   :  { %s1956_s0 = inlined_call_operand.hbm [shape: f32[768,128], index: 0, kind: input, shape index: {}]   ;;  %s1957_s1 = inlined_call_operand.hbm [shape: f32[128,384], index: 1, kind: input, shape index: {}]   ;;  %s1958_s2 = inlined_call_operand.hbm [shape: f32[1,384], index: 2, kind: input, shape index: {}]   ;;  %s1959_s3 = inlined_call_operand.hbm [shape: f32[768,384], index: 3, kind: output, shape index: {}]  }
   0x1   :  { %1977 = sst [smem:[#allocation25_spill]] %s1957_s1 }
   0x2   :  { %1978 = sst [smem:[#allocation26_spill]] %s1959_s3 }
   0x3   :  { %8 = vsyncpa [#allocation4], 0 }
   0x4   :  { %10 = vsyncpa [#allocation4 + $0x1], 0 }
   0x5   :  { %11 = vsyncpa [#allocation7], 0 }
   0x6   :  { %13 = vsyncpa [#allocation7 + $0x1], 0 }
   0x7   :  { %14 = vsyncpa [#allocation5], 0 }
   0x8   :  { %16 = vsyncpa [#allocation5 + $0x1], 0  ;;  %s1437_s12 = smov 0   ;;  %s1439_s13 = smov 0  }
   0x9   :  { %s1441_s14 = smov 0   ;;  %s1443_s15 = smov 0  }
   0xa   :  { %s1445_s16 = smov 0   ;;  %s1447_s17 = smov 0  }
   0xb   :  { %s1449_s18 = smov 0   ;;  %s1451_s19 = smov 0  }
   0xc   :  { %s1453_s20 = smov 0   ;;  %s1455_s21 = smov 0  }
   0xd   :  { %s1457_s22 = smov 0   ;;  %s1459_s23 = smov 0  }
   0xe   :  { %s1461_s24 = smov 0   ;;  %s1463_s25 = smov 0  }
   0xf LB: > { %1979 = sst [smem:[#allocation13_spill]] %s1361_s14  ;;  %s37_s26 = sadd.s32 1, %s1397_s23  ;;  %s1405_s25 = sphi %s1463_s25, %s22_s25   ;;  %s1401_s24 = sphi %s1461_s24, %s2039_s24   ;;  %s1397_s23 = sphi %s1459_s23, %s2038_s23   ;;  %s1393_s22 = sphi %s1457_s22, %s2028_s22   ;;  %s1389_s21 = sphi %s1455_s21, %s2027_s21   ;;  %s1385_s20 = sphi %s1453_s20, %s2026_s20   ;;  %s1381_s19 = sphi %s1451_s19, %s2037_s19   ;;  %s1377_s18 = sphi %s1449_s18, %s2036_s18   ;;  %s1373_s17 = sphi %s1447_s17, %s2024_s17   ;;  %s1369_s16 = sphi %s1445_s16, %s2035_s16   ;;  %s1365_s15 = sphi %s1443_s15, %s2034_s15   ;;  %s1361_s14 = sphi %s1441_s14, %s2022_s14   ;;  %s1357_s13 = sphi %s1439_s13, %s2033_s13   ;;  %s1353_s12 = sphi %s1437_s12, %s2032_s12  }
  0x10   : > { %1980 = sst [smem:[#allocation14_spill]] %s1373_s17  ;;  %p1962_p0 = scmp.eq.s32.totalorder %s1405_s25, 0 }
  0x11   : > { %1981 = sst [smem:[#allocation15_spill]] %s1385_s20  ;;  %p1511_p1 = scmp.ge.s32.totalorder %s37_s26, 3 }
  0x12   : > { %1982 = sst [smem:[#allocation16_spill]] %s1389_s21  ;;  %p85_p2 = scmp.ne.s32.totalorder %s1373_s17, %s1369_s16 }
  0x13   : > { %1983 = sst [smem:[#allocation17_spill]] %s1393_s22  ;;  %p1961_p4 = scmp.lt.s32.totalorder %s1405_s25, 9 }
  0x14   : > { %1984 = sst [smem:[#allocation18_spill]] %s1397_s23  ;;  %p87_p5 = por %p85_p2, %p1962_p0 }
  0x15   : > { %1985 = sst [smem:[#allocation19_spill]] %s1401_s24  ;;  %s191_s29 = sand.u32 1, %s1405_s25  }
  0x16   : > { %s1960_s30 = sand.u32 1, %s1373_s17   ;;  %s920_s5 = sshll.u32 %s1397_s23, 7 }
  0x17   : > { %s919_s4 = sshll.u32 %s1960_s30, 7  ;;  %s1987_s1 = sld [smem:[#allocation25_spill]] }
  0x18   : > { %s195_s9 = scalar_lea.vmem [#allocation6], %s919_s4  ;;  %p1535_p6 = pnand %p1961_p4, %p87_p5 }
  0x19   : > { %s204_s10 = sshll.u32 %s195_s9, 4  ;;  %s1542_s30 = scalar_lea.sflag [#allocation7], %s191_s29  ;;  %s1539_s10 = int_to_ptr.vmem [resolvable:$true] %s204_s10 }
  0x1a   : > { %p1973_p9 = pneg %p1535_p6 }
  0x1d   : > { %s1531_s8 = scalar_lea.hbm %s1987_s1, %s920_s5  ;;  %s1170_s7 = scalar_lea.hbm %s1987_s1, 6144 }
  0x1e   : > { %s1165_s5 = scalar_lea.hbm %s1531_s8, 2048  ;;  %p1171_p12 = scmp.lt.u32.totalorder %s1531_s8, %s1987_s1 }
  0x1f   : > { %p1166_p8 = scmp.ne.s32.totalorder %s1531_s8, %s1165_s5  ;;  %p1172_p13 = scmp.lt.u32.totalorder %s1170_s7, %s1165_s5 }
  0x20   : > { %p1174_p5 = scmp.lt.u32.totalorder %s1165_s5, %s1531_s8 }
  0x21   : > { %p1168_p10 = pnand %p1973_p9, %p1166_p8  ;;  %p1173_p2 = por %p1172_p13, %p1171_p12 }
  0x23   : > { %p1169_p11 = pneg %p1168_p10  ;;  %p1175_p4 = por %p1174_p5, %p1173_p2 }
  0x25   : > { %p1176_p3 = pnand %p1175_p4, %p1169_p11 }
  0x27   : > { %1179 = shalt.err (!%p1176_p3)
}
  0x28   : > { %s1180_s29 = scalar_lea.vmem %s1539_s10, 2048  ;;  %s1407_s4 = smov [#allocation6]  }
  0x29   : > { %p1181_p8 = scmp.ne.s32.totalorder %s1539_s10, %s1180_s29  ;;  %s1185_s6 = sshll.u32 %s1407_s4, 4  ;;  %s1186_s6 = int_to_ptr.vmem [resolvable:$false] %s1185_s6 }
  0x2a   : > { %s1187_s28 = scalar_lea.vmem %s1186_s6, 4096  ;;  %p1188_p7 = scmp.lt.s32.totalorder %s1539_s10, %s1186_s6 }
  0x2b   : > { %p1183_p10 = pnand %p1181_p8, %p1973_p9  ;;  %p1189_p12 = scmp.lt.s32.totalorder %s1187_s28, %s1180_s29 }
  0x2d   : > { %p1184_p0 = pneg %p1183_p10  ;;  %p1190_p13 = por %p1189_p12, %p1188_p7 }
  0x2f   : > { %p1191_p2 = pnand %p1190_p13, %p1184_p0 }
  0x31   : > { %1194 = shalt.err (!%p1191_p2)
}
  0x32   : > { %s1408_s5 = smov 384   ;;  %s1963_s7 = smov 128  }
  0x33   : > { %s1964_s9 = smov 8   ;;  %p229_p0 = scmp.lt.s32.totalorder %s1405_s25, 10 }
  0x34   : > { %1037 = dma.hbm_to_vmem [thread:$0]  (!%p1535_p6), %s1531_s8, 2048, %s1539_s10, %s1542_s30, %s1408_s5, %s1963_s7, %s1964_s9  }
  0x35   : > { %p1989_p3 = scmp.ge.s32.totalorder %s1405_s25, 1  ;;  %s1580_s4 = sadd.s32 4294967295, %s1405_s25  }
  0x36   : > { %s913_s6 = sadd.s32 4294967294, %s1405_s25   ;;  %s2041_s26 = smov (%p1511_p1, %s37_s26), 0 }
  0x37   : > { %p1575_p4 = pnand %p1989_p3, %p229_p0  ;;  %1991 = sst [smem:[#allocation20_spill]] %s2041_s26 }
  0x38   : > { %s41_s28 = sadd.s32 1, %s1401_s24  ;;  %s50_s8 = sadd.s32 1, %s1385_s20 }
  0x39   : > { %s1990_s29 = scalar_select %p1575_p4, 1, 0 }
  0x3a   : > { %s2043_s28 = smov (!%p1511_p1, %s41_s28), %s1401_s24  ;;  %p57_p7 = scmp.ne.s32.totalorder %s1385_s20, %s1381_s19 }
  0x3b   : > { %p63_p11 = scmp.ne.s32.totalorder %s1381_s19, %s1377_s18  ;;  %p43_p5 = scmp.ge.s32.totalorder %s2043_s28, 3 }
  0x3c   : > { %p64_p8 = scmp.eq.s32.totalorder %s1580_s4, 0  ;;  %p1992_p10 = scmp.eq.s32.totalorder %s1405_s25, 0 }
  0x3d   : > { %s74_s5 = ssub.s32 %s1397_s23, %s2041_s26  ;;  %s2045_s28 = smov (%p43_p5, %s2043_s28), 0 }
  0x3e   : > { %p1601_p12 = por %p1992_p10, %p57_p7  ;;  %1994 = sst [smem:[#allocation21_spill]] %s2045_s28 }
  0x3f   : > { %p1609_p1 = por %p64_p8, %p63_p11  ;;  %p76_p13 = scmp.eq.s32.totalorder %s74_s5, 0 }
  0x40   : > { %s45_s18 = ssub.s32 %s1401_s24, %s2045_s28  ;;  %p1996_p2 = scmp.ne.s32.totalorder %s1369_s16, %s1365_s15 }
  0x41   : > { %s1995_s27 = scalar_select %p1609_p1, 1, 0 }
  0x42   : > { %p1618_p0 = por %p1996_p2, %p64_p8  ;;  %p48_p3 = scmp.eq.s32.totalorder %s45_s18, 0 }
  0x43   : > { %s129_s9 = sor.u32 %s74_s5, %s45_s18  ;;  %s1998_s1 = sadd.s32 1, %s1373_s17 }
  0x44   : > { %s1997_s7 = scalar_select %p1618_p0, 1, 0 }
  0x45   : > { %s1625_s26 = scalar_select %p76_p13, %s1373_s17, %s1998_s1  }
  0x46   : > { %s1628_s3 = scalar_select %p48_p3, %s1385_s20, %s50_s8  }
  0x47   : > { %1999 = sst [smem:[#allocation22_spill]] %s1625_s26  ;;  %p130_p7 = scmp.eq.s32.totalorder %s129_s9, 0 }
  0x48   : > { %2000 = sst [smem:[#allocation23_spill]] %s1628_s3  ;;  %s132_s21 = sadd.s32 1, %s1361_s14 }
  0x49   : > { %p142_p11 = scmp.ne.s32.totalorder %s1361_s14, %s1357_s13  ;;  %p143_p5 = scmp.eq.s32.totalorder %s1580_s4, 8 }
  0x4a   : > { %s1635_s15 = scalar_select %p130_p7, %s1361_s14, %s132_s21  }
  0x4b   : > { %p1637_p8 = por %p143_p5, %p142_p11  ;;  %p148_p10 = scmp.ne.s32.totalorder %s1357_s13, %s1353_s12 }
  0x4c   : > { %2001 = sst [smem:[#allocation24_spill]] %s1635_s15  ;;  %p149_p2 = scmp.eq.s32.totalorder %s913_s6, 8 }
  0x4d   : > { %s2002_s28 = scalar_select %p1637_p8, 1, 0 }
  0x4e   : > { %s169_s1 = sand.u32 1, %s1385_s20   ;;  %p1644_p13 = por %p149_p2, %p148_p10 }
  0x4f   : > { %s916_s5 = sshll.u32 %s169_s1, 8  ;;  %s933_s9 = sshll.u32 %s1401_s24, 12 }
  0x50   : > { %s2003_s8 = scalar_select %p1644_p13, 1, 0 }
  0x51   : > { %s173_s18 = scalar_lea.vmem [#allocation3], %s916_s5  ;;  %s1652_s21 = scalar_lea.hbm %s1956_s0, %s933_s9 }
  0x52   : > { %s181_s3 = sshll.u32 %s173_s18, 4  ;;  %p2004_p3 = scmp.lt.s32.totalorder %s1405_s25, 9  ;;  %s1654_s3 = int_to_ptr.vmem [resolvable:$true] %s181_s3 }
  0x53   : > { %s921_s5 = sshll.u32 %s1397_s23, 4  ;;  %s2006_s18 = sand.u32 1, %s1373_s17  }
  0x54   : > { %p1660_p7 = pnand %p2004_p3, %p1601_p12  ;;  %s1667_s24 = scalar_lea.vmem [#allocation8], %s2006_s18 }
  0x55   : > { %s1673_s20 = scalar_lea.hbm %s1958_s2, %s921_s5  ;;  %s1675_s10 = scalar_lea.sflag [#allocation4], %s169_s1 }
  0x56   : > { %s1195_s15 = scalar_lea.hbm %s1652_s21, 4096  ;;  %p1197_p11 = pneg %p1660_p7 }
  0x57   : > { %p1196_p12 = scmp.ne.s32.totalorder %s1652_s21, %s1195_s15  ;;  %s1200_s17 = scalar_lea.hbm %s1956_s0, 12288 }
  0x58   : > { %p1201_p2 = scmp.lt.u32.totalorder %s1652_s21, %s1956_s0  ;;  %p1202_p3 = scmp.lt.u32.totalorder %s1200_s17, %s1195_s15 }
  0x59   : > { %p1198_p5 = pnand %p1197_p11, %p1196_p12  ;;  %p1204_p13 = scmp.lt.u32.totalorder %s1195_s15, %s1652_s21 }
  0x5a   : > { %p1203_p9 = por %p1202_p3, %p1201_p2 }
  0x5b   : > { %p1199_p10 = pneg %p1198_p5 }
  0x5c   : > { %p1205_p8 = por %p1204_p13, %p1203_p9 }
  0x5e   : > { %p1206_p0 = pnand %p1205_p8, %p1199_p10 }
  0x60   : > { %1209 = shalt.err (!%p1206_p0)
}
  0x61   : > { %s1210_s1 = scalar_lea.vmem %s1654_s3, 4096  ;;  %s1411_s23 = smov [#allocation3]  }
  0x62   : > { %p1211_p12 = scmp.ne.s32.totalorder %s1654_s3, %s1210_s1  ;;  %s1215_s5 = sshll.u32 %s1411_s23, 4  ;;  %s1216_s5 = int_to_ptr.vmem [resolvable:$false] %s1215_s5 }
  0x63   : > { %s1217_s14 = scalar_lea.vmem %s1216_s5, 8192  ;;  %p1218_p4 = scmp.lt.s32.totalorder %s1654_s3, %s1216_s5 }
  0x64   : > { %p1213_p5 = pnand %p1211_p12, %p1197_p11  ;;  %p1219_p2 = scmp.lt.s32.totalorder %s1217_s14, %s1210_s1 }
  0x66   : > { %p1214_p1 = pneg %p1213_p5  ;;  %p1220_p3 = por %p1219_p2, %p1218_p4 }
  0x68   : > { %p1221_p9 = pnand %p1220_p3, %p1214_p1 }
  0x6a   : > { %1224 = shalt.err (!%p1221_p9)
}
  0x6b   : > { %s2007_s17 = smov 8   ;;  %s2008_s15 = smov 128  }
  0x6c   : > { %1034 = dma.hbm_to_vmem [thread:$0]  (!%p1660_p7), %s1652_s21, 4096, %s1654_s3, %s1675_s10, %s2008_s15, %s2008_s15, %s2007_s17  }
  0x6d   : > { %s2009_s22 = sshll.u32 %s1667_s24, 4  ;;  %s1225_s26 = scalar_lea.hbm %s1673_s20, 16  ;;  %s225_s22 = int_to_ptr.vmem [resolvable:$true] %s2009_s22 }
  0x6e   : > { %p1226_p4 = scmp.ne.s32.totalorder %s1673_s20, %s1225_s26  ;;  %p2010_p1 = pneg %p1535_p6 }
  0x6f   : > { %s1230_s18 = scalar_lea.hbm %s1958_s2, 48  ;;  %p1231_p13 = scmp.lt.u32.totalorder %s1673_s20, %s1958_s2 }
  0x70   : > { %p1228_p0 = pnand %p1226_p4, %p2010_p1  ;;  %p1232_p11 = scmp.lt.u32.totalorder %s1230_s18, %s1225_s26 }
  0x71   : > { %p1234_p12 = scmp.lt.u32.totalorder %s1225_s26, %s1673_s20 }
  0x72   : > { %p1229_p8 = pneg %p1228_p0  ;;  %p1233_p10 = por %p1232_p11, %p1231_p13 }
  0x74   : > { %p1235_p7 = por %p1234_p12, %p1233_p10 }
  0x76   : > { %p1236_p5 = pnand %p1235_p7, %p1229_p8 }
  0x78   : > { %1239 = shalt.err (!%p1236_p5)
}
  0x79   : > { %s1240_s3 = scalar_lea.vmem %s225_s22, 16  ;;  %p2011_p3 = pmov %p2010_p1 }
  0x7a   : > { %p1241_p2 = scmp.ne.s32.totalorder %s225_s22, %s1240_s3  ;;  %s1412_s24 = smov [#allocation8]  }
  0x7b   : > { %s1245_s21 = sshll.u32 %s1412_s24, 4  ;;  %s1246_s21 = int_to_ptr.vmem [resolvable:$false] %s1245_s21 }
  0x7c   : > { %p1243_p9 = pnand %p1241_p2, %p2011_p3  ;;  %s1247_s10 = scalar_lea.vmem %s1246_s21, 32 }
  0x7d   : > { %p1248_p1 = scmp.lt.s32.totalorder %s225_s22, %s1246_s21  ;;  %p1249_p0 = scmp.lt.s32.totalorder %s1247_s10, %s1240_s3 }
  0x7e   : > { %p1244_p4 = pneg %p1243_p9 }
  0x7f   : > { %p1250_p11 = por %p1249_p0, %p1248_p1 }
  0x81   : > { %p1251_p13 = pnand %p1250_p11, %p1244_p4 }
  0x83   : > { %1254 = shalt.err (!%p1251_p13)
}
  0x84   : > { %1040 = dma.hbm_to_vmem [thread:$0]  (!%p1535_p6), %s1673_s20, 16, %s225_s22, %s1542_s30  }
  0x85   : > { %p2012_p8 = scmp.ne.s32.totalorder %s1990_s29, 0 }
  0x86   : > { %s235_s5 = sand.u32 (!%p2012_p8), 1, %s1381_s19   ;;  %p2013_p10 = scmp.ne.s32.totalorder (!%p2012_p8), %s1995_s27, 0 }
  0x87   : > { %233 = sbr.rel (%p2012_p8) target bundleno = 440 (0x1b8), region = 32  ;;  %s923_s14 = sshll.u32 (!%p2012_p8), %s235_s5, 8 }
  0x88   : > { %s236_s17 = scalar_lea.sflag (!%p2012_p8), [#allocation4], %s235_s5  ;;  %s1731_s15 = scalar_lea.vmem (!%p2012_p8), [#allocation3], %s923_s14 }
  0x8e   : > { %1340 = dma.done.wait (%p2013_p10), %s236_s17, 4096  }
  0x8f   : > { %1342 = vsyncadd (%p2013_p10), %s236_s17, 4294963200  ;;  %s244_s20 = sand.u32 1, %s1580_s4   ;;  %s246_s30 = sand.u32 1, %s1369_s16  }
  0x90   : > { %s924_s11 = sshll.u32 %s246_s30, 7  ;;  %s245_s29 = scalar_lea.sflag [#allocation7], %s244_s20 }
  0x91   : > { %s1741_s22 = scalar_lea.vmem [#allocation6], %s924_s11  ;;  %p2014_p6 = scmp.ne.s32.totalorder %s1997_s7, 0 }
  0x93   : > { %1344 = dma.done.wait (%p2014_p6), %s245_s29, 2064  }
  0x94   : > { %1346 = vsyncadd (%p2014_p6), %s245_s29, 4294965232  ;;  %v408_v0 = vld [vmem:[%s1741_s22] sm:$0xff]  ;;  %v409_v1 = vld [vmem:[%s1741_s22 + $0x8] sm:$0xff]  ;;  %s285_s7 = sand.u32 1, %s1357_s13   ;;  %s256_s27 = scalar_lea.vmem [#allocation8], %s246_s30 }
  0x95   : > { %v410_v2 = vld [vmem:[%s1741_s22 + $0x10] sm:$0xff]  ;;  %v424_v3 = vpack.c.bf16 %v409_v1, %v408_v0  ;;  %v411_v4 = vld [vmem:[%s1741_s22 + $0x18] sm:$0xff]  ;;  %v412_v6 = vld [vmem:[%s1741_s22 + $0x20] sm:$0xff]  ;;  %s925_s4 = sshll.u32 %s285_s7, 8  ;;  %s2015_s6 = sld [smem:[#allocation17_spill]] }
  0x96   : > { %v425_v5 = vpack.c.bf16 %v411_v4, %v410_v2  ;;  %v413_v7 = vld [vmem:[%s1741_s22 + $0x28] sm:$0xff]  ;;  %v414_v9 = vld [vmem:[%s1741_s22 + $0x30] sm:$0xff]  ;;  %v360_v10 = vld [vmem:[%s1731_s15] sm:$0xff]  ;;  %s1806_s26 = scalar_lea.vmem [#allocation9], %s925_s4  ;;  %s2016_s18 = sld [smem:[#allocation16_spill]] }
  0x97   : > { %958 = vmatprep.subr.bf16.mxu0 %v424_v3  ;;  %1006 = vmatprep.subr.bf16.mxu1 %v424_v3  ;;  %v426_v8 = vpack.c.bf16 %v413_v7, %v412_v6  ;;  %v361_v11 = vld [vmem:[%s1731_s15 + $0x8] sm:$0xff]  ;;  %v415_v12 = vld [vmem:[%s1741_s22 + $0x38] sm:$0xff]  ;;  %v376_v14 = vld [vmem:[%s1731_s15 + $0x80] sm:$0xff]  ;;  %s779_s3 = sshll.u32 %s1806_s26, 4  ;;  %s2017_s10 = sld [smem:[#allocation26_spill]]  ;;  %s1868_s3 = int_to_ptr.vmem [resolvable:$true] %s779_s3 }
  0x98   : > { %959 = vmatpush3.bf16.msra.mxu0 %v424_v3  ;;  %1014 = vmatpush3.bf16.msra.mxu1 %v424_v3  ;;  %v392_v13 = vpack.c.bf16 %v361_v11, %v360_v10  ;;  %v377_v15 = vld [vmem:[%s1731_s15 + $0x88] sm:$0xff]  ;;  %v427_v17 = vpack.c.bf16 %v415_v12, %v414_v9  ;;  %v416_v18 = vld [vmem:[%s1741_s22 + $0x40] sm:$0xff]  ;;  %v418_v21 = vld [vmem:[%s1741_s22 + $0x50] sm:$0xff]  ;;  %s1880_s14 = scalar_lea.sflag [#allocation5], %s285_s7  ;;  %s1255_s17 = scalar_lea.vmem %s1868_s3, 4096 }
  0x99   : > { %960 = vmatprep.subr.bf16.mxu0 %v425_v5  ;;  %1007 = vmatprep.subr.bf16.mxu1 %v425_v5  ;;  %v400_v16 = vpack.c.bf16 %v377_v15, %v376_v14  ;;  %v417_v19 = vld [vmem:[%s1741_s22 + $0x48] sm:$0xff]  ;;  %v419_v22 = vld [vmem:[%s1741_s22 + $0x58] sm:$0xff]  ;;  %v420_v24 = vld [vmem:[%s1741_s22 + $0x60] sm:$0xff]  ;;  %p1256_p12 = scmp.ne.s32.totalorder %s1868_s3, %s1255_s17  ;;  %p2018_p7 = scmp.ne.s32.totalorder %s2002_s28, 0 }
  0x9a   : > { %974 = vmatprep.mubr.bf16.mxu0 %v392_v13  ;;  %v428_v20 = vpack.c.bf16 %v417_v19, %v416_v18  ;;  %v429_v23 = vpack.c.bf16 %v419_v22, %v418_v21  ;;  %v421_v25 = vld [vmem:[%s1741_s22 + $0x68] sm:$0xff]  ;;  %v422_v27 = vld [vmem:[%s1741_s22 + $0x70] sm:$0xff]  ;;  %v423_v28 = vld [vmem:[%s1741_s22 + $0x78] sm:$0xff] }
  0x9b   : > { %990 = vmatprep.mubr.bf16.mxu1 %v400_v16  ;;  %v430_v26 = vpack.c.bf16 %v421_v25, %v420_v24  ;;  %v431_v29 = vpack.c.bf16 %v423_v28, %v422_v27  ;;  %v362_v30 = vld [vmem:[%s1731_s15 + $0x10] sm:$0xff]  ;;  %v363_v31 = vld [vmem:[%s1731_s15 + $0x18] sm:$0xff]  ;;  %v364_v34 = vld [vmem:[%s1731_s15 + $0x20] sm:$0xff]  ;;  %s1022_s9 = smul.u32 96, %s2015_s6  ;;  %p1257_p5 = pnand %p1256_p12, %p2018_p7 }
  0x9c   : > { %961 = vmatpush3.bf16.msra.mxu0 %v425_v5  ;;  %1015 = vmatpush3.bf16.msra.mxu1 %v425_v5  ;;  %v378_v32 = vld [vmem:[%s1731_s15 + $0x90] sm:$0xff]  ;;  %v379_v33 = vld [vmem:[%s1731_s15 + $0x98] sm:$0xff]  ;;  %v365_v35 = vld [vmem:[%s1731_s15 + $0x28] sm:$0xff]  ;;  %v393_v38 = vpack.c.bf16 %v363_v31, %v362_v30 }
  0x9d   : > { %962 = vmatprep.subr.bf16.mxu0 %v426_v8  ;;  %1008 = vmatprep.subr.bf16.mxu1 %v426_v8  ;;  %v380_v36 = vld [vmem:[%s1731_s15 + $0xa0] sm:$0xff]  ;;  %v381_v37 = vld [vmem:[%s1731_s15 + $0xa8] sm:$0xff]  ;;  %v401_v39 = vpack.c.bf16 %v379_v33, %v378_v32  ;;  %v394_v40 = vpack.c.bf16 %v365_v35, %v364_v34  ;;  %v366_v42 = vld [vmem:[%s1731_s15 + $0x30] sm:$0xff]  ;;  %s776_s1 = sadd.s32 %s2016_s18, %s1022_s9  ;;  %p1258_p2 = pneg %p1257_p5 }
  0x9e   : > { %v402_v41 = vpack.c.bf16 %v381_v37, %v380_v36  ;;  %v367_v43 = vld [vmem:[%s1731_s15 + $0x38] sm:$0xff]  ;;  %v382_v44 = vld [vmem:[%s1731_s15 + $0xb0] sm:$0xff]  ;;  %v368_v46 = vld [vmem:[%s1731_s15 + $0x40] sm:$0xff]  ;;  %s930_s23 = sshll.u32 %s776_s1, 7 }
  0x9f   : > { %v383_v45 = vld [vmem:[%s1731_s15 + $0xb8] sm:$0xff]  ;;  %v369_v47 = vld [vmem:[%s1731_s15 + $0x48] sm:$0xff]  ;;  %v384_v48 = vld [vmem:[%s1731_s15 + $0xc0] sm:$0xff]  ;;  %v395_v50 = vpack.c.bf16 %v367_v43, %v366_v42  ;;  %s1862_s5 = scalar_lea.hbm %s2017_s10, %s930_s23 }
  0xa0   : > { %963 = vmatpush3.bf16.msra.mxu0 %v426_v8  ;;  %1016 = vmatpush3.bf16.msra.mxu1 %v426_v8  ;;  %v385_v49 = vld [vmem:[%s1731_s15 + $0xc8] sm:$0xff]  ;;  %v403_v51 = vpack.c.bf16 %v383_v45, %v382_v44  ;;  %v396_v52 = vpack.c.bf16 %v369_v47, %v368_v46  ;;  %v370_v54 = vld [vmem:[%s1731_s15 + $0x50] sm:$0xff]  ;;  %v371_v55 = vld [vmem:[%s1731_s15 + $0x58] sm:$0xff] }
  0xa1   : > { %964 = vmatprep.subr.bf16.mxu0 %v427_v17  ;;  %1009 = vmatprep.subr.bf16.mxu1 %v427_v17  ;;  %v404_v53 = vpack.c.bf16 %v385_v49, %v384_v48  ;;  %v386_v56 = vld [vmem:[%s1731_s15 + $0xd0] sm:$0xff]  ;;  %v387_v57 = vld [vmem:[%s1731_s15 + $0xd8] sm:$0xff]  ;;  %v372_v58 = vld [vmem:[%s1731_s15 + $0x60] sm:$0xff]  ;;  %v397_v62 = vpack.c.bf16 %v371_v55, %v370_v54 }
  0xa2   : > { %v373_v59 = vld [vmem:[%s1731_s15 + $0x68] sm:$0xff]  ;;  %v388_v60 = vld [vmem:[%s1731_s15 + $0xe0] sm:$0xff]  ;;  %v405_v63 = vpack.c.bf16 %v387_v57, %v386_v56  ;;  %v374_v2 = vld [vmem:[%s1731_s15 + $0x70] sm:$0xff] }
  0xa3   : > { %v389_v61 = vld [vmem:[%s1731_s15 + $0xe8] sm:$0xff]  ;;  %v398_v0 = vpack.c.bf16 %v373_v59, %v372_v58  ;;  %v375_v3 = vld [vmem:[%s1731_s15 + $0x78] sm:$0xff]  ;;  %v390_v4 = vld [vmem:[%s1731_s15 + $0xf0] sm:$0xff] }
  0xa4   : > { %965 = vmatpush3.bf16.msra.mxu0 %v427_v17  ;;  %1017 = vmatpush3.bf16.msra.mxu1 %v427_v17  ;;  %v406_v1 = vpack.c.bf16 %v389_v61, %v388_v60  ;;  %v391_v5 = vld [vmem:[%s1731_s15 + $0xf8] sm:$0xff]  ;;  %v399_v6 = vpack.c.bf16 %v375_v3, %v374_v2  ;;  %v1800_v8 = vld [vmem:[%s256_s27] ss:$0 sm:$0xff]  ;;  %s1413_s15 = smov [#allocation9]  }
  0xa5   : > { %966 = vmatprep.subr.bf16.mxu0 %v428_v20  ;;  %1010 = vmatprep.subr.bf16.mxu1 %v428_v20  ;;  %v407_v7 = vpack.c.bf16 %v391_v5, %v390_v4  ;;  %s1259_s20 = sshll.u32 %s1413_s15, 4  ;;  %s1260_s20 = int_to_ptr.vmem [resolvable:$false] %s1259_s20 }
  0xa6   : > { %s1261_s30 = scalar_lea.vmem %s1260_s20, 8192  ;;  %p1262_p3 = scmp.lt.s32.totalorder %s1868_s3, %s1260_s20 }
  0xa7   : > { %p1263_p9 = scmp.lt.s32.totalorder %s1261_s30, %s1255_s17 }
  0xa8   : > { %967 = vmatpush3.bf16.msra.mxu0 %v428_v20  ;;  %1018 = vmatpush3.bf16.msra.mxu1 %v428_v20 }
  0xa9   : > { %968 = vmatprep.subr.bf16.mxu0 %v429_v23  ;;  %1011 = vmatprep.subr.bf16.mxu1 %v429_v23  ;;  %p1264_p4 = por %p1263_p9, %p1262_p3 }
  0xab   : > { %p1265_p1 = pnand %p1264_p4, %p1258_p2 }
  0xac   : > { %969 = vmatpush3.bf16.msra.mxu0 %v429_v23  ;;  %1019 = vmatpush3.bf16.msra.mxu1 %v429_v23 }
  0xad   : > { %970 = vmatprep.subr.bf16.mxu0 %v430_v26  ;;  %1012 = vmatprep.subr.bf16.mxu1 %v430_v26 }
  0xb0   : > { %971 = vmatpush3.bf16.msra.mxu0 %v430_v26  ;;  %1020 = vmatpush3.bf16.msra.mxu1 %v430_v26 }
  0xb1   : > { %972 = vmatprep.subr.bf16.mxu0 %v431_v29  ;;  %1013 = vmatprep.subr.bf16.mxu1 %v431_v29 }
  0xb4   : > { %973 = vmatpush3.bf16.msra.mxu0 %v431_v29  ;;  %1021 = vmatpush3.bf16.msra.mxu1 %v431_v29 }
  0xb7   : > { %975 = vmatmul.mubr.bf16.vlgmr.msra.gmra.mrb[0].mxu0 %v393_v38  ;;  %991 = vmatmul.mubr.bf16.vlgmr.msra.gmra.mrb[0].mxu1 %v401_v39 }
  0xb8   : > { %978 = vmatprep.mubr.bf16.mxu0 %v394_v40  ;;  %994 = vmatprep.mubr.bf16.mxu1 %v402_v41 }
  0xbf   : > { %979 = vmatmul.mubr.bf16.gmra.mrb[4].mxu0 %v395_v50  ;;  %995 = vmatmul.mubr.bf16.gmra.mrb[4].mxu1 %v403_v51 }
  0xc0   : > { %982 = vmatprep.mubr.bf16.mxu0 %v396_v52  ;;  %998 = vmatprep.mubr.bf16.mxu1 %v404_v53 }
  0xc7   : > { %983 = vmatmul.mubr.bf16.gmra.mrb[8].mxu0 %v397_v62  ;;  %999 = vmatmul.mubr.bf16.gmra.mrb[8].mxu1 %v405_v63 }
  0xc8   : > { %986 = vmatprep.mubr.bf16.mxu0 %v398_v0  ;;  %1002 = vmatprep.mubr.bf16.mxu1 %v406_v1 }
  0xcf   : > { %987 = vmatmul.mubr.bf16.gmra.mrb[12].mxu0 %v399_v6  ;;  %1003 = vmatmul.mubr.bf16.gmra.mrb[12].mxu1 %v407_v7 }
 0x18a   : > { %v976_v9 = vpop.f32.mrb[0].mxu0  ;;  %v992_v10 = vpop.f32.mrb[0].mxu1 }
 0x18b   : > { %v701_v11 = vadd.f32 %v976_v9, %v1800_v8  ;;  %v717_v12 = vadd.f32 %v992_v10, %v1800_v8  ;;  %v466_v13 = vpop.f32.mrb[1].mxu0  ;;  %v530_v14 = vpop.f32.mrb[1].mxu1 }
 0x18c   : > { %v699_v15 = vadd.f32 %v1800_v8, %v466_v13  ;;  %v715_v16 = vadd.f32 %v1800_v8, %v530_v14  ;;  %v977_v17 = vpop.f32.mrb[2].mxu0  ;;  %v993_v18 = vpop.f32.mrb[2].mxu1 }
 0x18d   : > { %733 = vst [vmem:[%s1806_s26 + $0x10] sm:$0xff] %v701_v11  ;;  %749 = vst [vmem:[%s1806_s26 + $0x90] sm:$0xff] %v717_v12  ;;  %v702_v19 = vadd.f32 %v977_v17, %v1800_v8  ;;  %v718_v20 = vadd.f32 %v993_v18, %v1800_v8  ;;  %v469_v21 = vpop.f32.mrb[3].mxu0  ;;  %v533_v22 = vpop.f32.mrb[3].mxu1 }
 0x18e   : > { %731 = vst [vmem:[%s1806_s26] sm:$0xff] %v699_v15  ;;  %747 = vst [vmem:[%s1806_s26 + $0x80] sm:$0xff] %v715_v16  ;;  %v700_v23 = vadd.f32 %v1800_v8, %v469_v21  ;;  %v716_v24 = vadd.f32 %v1800_v8, %v533_v22 }
 0x18f   : > { %734 = vst [vmem:[%s1806_s26 + $0x18] sm:$0xff] %v702_v19  ;;  %750 = vst [vmem:[%s1806_s26 + $0x98] sm:$0xff] %v718_v20 }
 0x190   : > { %732 = vst [vmem:[%s1806_s26 + $0x8] sm:$0xff] %v700_v23  ;;  %748 = vst [vmem:[%s1806_s26 + $0x88] sm:$0xff] %v716_v24 }
 0x192   : > { %v980_v25 = vpop.f32.mrb[4].mxu0  ;;  %v996_v26 = vpop.f32.mrb[4].mxu1 }
 0x193   : > { %v705_v27 = vadd.f32 %v980_v25, %v1800_v8  ;;  %v721_v28 = vadd.f32 %v996_v26, %v1800_v8  ;;  %v482_v29 = vpop.f32.mrb[5].mxu0  ;;  %v546_v30 = vpop.f32.mrb[5].mxu1 }
 0x194   : > { %v703_v31 = vadd.f32 %v1800_v8, %v482_v29  ;;  %v719_v32 = vadd.f32 %v1800_v8, %v546_v30  ;;  %v981_v33 = vpop.f32.mrb[6].mxu0  ;;  %v997_v34 = vpop.f32.mrb[6].mxu1 }
 0x195   : > { %737 = vst [vmem:[%s1806_s26 + $0x30] sm:$0xff] %v705_v27  ;;  %753 = vst [vmem:[%s1806_s26 + $0xb0] sm:$0xff] %v721_v28  ;;  %v706_v35 = vadd.f32 %v981_v33, %v1800_v8  ;;  %v722_v36 = vadd.f32 %v997_v34, %v1800_v8  ;;  %v485_v37 = vpop.f32.mrb[7].mxu0  ;;  %v549_v38 = vpop.f32.mrb[7].mxu1 }
 0x196   : > { %735 = vst [vmem:[%s1806_s26 + $0x20] sm:$0xff] %v703_v31  ;;  %751 = vst [vmem:[%s1806_s26 + $0xa0] sm:$0xff] %v719_v32  ;;  %v704_v39 = vadd.f32 %v1800_v8, %v485_v37  ;;  %v720_v40 = vadd.f32 %v1800_v8, %v549_v38 }
 0x197   : > { %738 = vst [vmem:[%s1806_s26 + $0x38] sm:$0xff] %v706_v35  ;;  %754 = vst [vmem:[%s1806_s26 + $0xb8] sm:$0xff] %v722_v36 }
 0x198   : > { %736 = vst [vmem:[%s1806_s26 + $0x28] sm:$0xff] %v704_v39  ;;  %752 = vst [vmem:[%s1806_s26 + $0xa8] sm:$0xff] %v720_v40 }
 0x19a   : > { %v984_v41 = vpop.f32.mrb[8].mxu0  ;;  %v1000_v42 = vpop.f32.mrb[8].mxu1 }
 0x19b   : > { %v709_v43 = vadd.f32 %v984_v41, %v1800_v8  ;;  %v725_v44 = vadd.f32 %v1000_v42, %v1800_v8  ;;  %v498_v45 = vpop.f32.mrb[9].mxu0  ;;  %v562_v46 = vpop.f32.mrb[9].mxu1 }
 0x19c   : > { %v707_v47 = vadd.f32 %v1800_v8, %v498_v45  ;;  %v723_v48 = vadd.f32 %v1800_v8, %v562_v46  ;;  %v985_v49 = vpop.f32.mrb[10].mxu0  ;;  %v1001_v50 = vpop.f32.mrb[10].mxu1 }
 0x19d   : > { %741 = vst [vmem:[%s1806_s26 + $0x50] sm:$0xff] %v709_v43  ;;  %757 = vst [vmem:[%s1806_s26 + $0xd0] sm:$0xff] %v725_v44  ;;  %v710_v51 = vadd.f32 %v985_v49, %v1800_v8  ;;  %v726_v52 = vadd.f32 %v1001_v50, %v1800_v8  ;;  %v501_v53 = vpop.f32.mrb[11].mxu0  ;;  %v565_v54 = vpop.f32.mrb[11].mxu1 }
 0x19e   : > { %739 = vst [vmem:[%s1806_s26 + $0x40] sm:$0xff] %v707_v47  ;;  %755 = vst [vmem:[%s1806_s26 + $0xc0] sm:$0xff] %v723_v48  ;;  %v708_v55 = vadd.f32 %v1800_v8, %v501_v53  ;;  %v724_v56 = vadd.f32 %v1800_v8, %v565_v54 }
 0x19f   : > { %742 = vst [vmem:[%s1806_s26 + $0x58] sm:$0xff] %v710_v51  ;;  %758 = vst [vmem:[%s1806_s26 + $0xd8] sm:$0xff] %v726_v52 }
 0x1a0   : > { %740 = vst [vmem:[%s1806_s26 + $0x48] sm:$0xff] %v708_v55  ;;  %756 = vst [vmem:[%s1806_s26 + $0xc8] sm:$0xff] %v724_v56 }
 0x1a2   : > { %v988_v57 = vpop.f32.mrb[12].mxu0  ;;  %v1004_v58 = vpop.f32.mrb[12].mxu1 }
 0x1a3   : > { %v713_v59 = vadd.f32 %v988_v57, %v1800_v8  ;;  %v729_v60 = vadd.f32 %v1004_v58, %v1800_v8  ;;  %v514_v61 = vpop.f32.mrb[13].mxu0  ;;  %v578_v62 = vpop.f32.mrb[13].mxu1 }
 0x1a4   : > { %v711_v63 = vadd.f32 %v1800_v8, %v514_v61  ;;  %v727_v0 = vadd.f32 %v1800_v8, %v578_v62  ;;  %v989_v1 = vpop.f32.mrb[14].mxu0  ;;  %v1005_v2 = vpop.f32.mrb[14].mxu1 }
 0x1a5   : > { %745 = vst [vmem:[%s1806_s26 + $0x70] sm:$0xff] %v713_v59  ;;  %761 = vst [vmem:[%s1806_s26 + $0xf0] sm:$0xff] %v729_v60  ;;  %v714_v3 = vadd.f32 %v989_v1, %v1800_v8  ;;  %v730_v4 = vadd.f32 %v1005_v2, %v1800_v8  ;;  %v517_v5 = vpop.f32.mrb[15].mxu0  ;;  %v581_v6 = vpop.f32.mrb[15].mxu1 }
 0x1a6   : > { %743 = vst [vmem:[%s1806_s26 + $0x60] sm:$0xff] %v711_v63  ;;  %759 = vst [vmem:[%s1806_s26 + $0xe0] sm:$0xff] %v727_v0  ;;  %v712_v7 = vadd.f32 %v1800_v8, %v517_v5  ;;  %v728_v9 = vadd.f32 %v1800_v8, %v581_v6 }
 0x1a7   : > { %746 = vst [vmem:[%s1806_s26 + $0x78] sm:$0xff] %v714_v3  ;;  %762 = vst [vmem:[%s1806_s26 + $0xf8] sm:$0xff] %v730_v4 }
 0x1a8   : > { %744 = vst [vmem:[%s1806_s26 + $0x68] sm:$0xff] %v712_v7  ;;  %760 = vst [vmem:[%s1806_s26 + $0xe8] sm:$0xff] %v728_v9 }
 0x1a9   : > { %1268 = shalt.err (!%p1265_p1)
}
 0x1aa   : > { %s1269_s11 = scalar_lea.hbm %s1862_s5, 4096  ;;  %s1273_s7 = scalar_lea.hbm %s2017_s10, 36864 }
 0x1ab   : > { %p1270_p0 = scmp.ne.s32.totalorder %s1862_s5, %s1269_s11  ;;  %p1274_p8 = scmp.lt.u32.totalorder %s1862_s5, %s2017_s10 }
 0x1ac   : > { %p1275_p10 = scmp.lt.u32.totalorder %s1273_s7, %s1269_s11  ;;  %p1277_p12 = scmp.lt.u32.totalorder %s1269_s11, %s1862_s5 }
 0x1ad   : > { %p1271_p11 = pnand %p1270_p0, %p2018_p7 }
 0x1ae   : > { %p1276_p6 = por %p1275_p10, %p1274_p8 }
 0x1af   : > { %p1272_p13 = pneg %p1271_p11 }
 0x1b0   : > { %p1278_p5 = por %p1277_p12, %p1276_p6 }
 0x1b2   : > { %p1279_p2 = pnand %p1278_p5, %p1272_p13 }
 0x1b4   : > { %1282 = shalt.err (!%p1279_p2)
}
 0x1b5   : > { %s1414_s26 = smov 128   ;;  %s1415_s6 = smov 384  }
 0x1b6   : > { %s1416_s9 = smov 8  }
 0x1b7   : > { %1029 = dma.vmem_to_hbm [thread:$0]  (%p2018_p7), %s1868_s3, 4096, %s1862_s5, %s1880_s14, %s1414_s26, %s1415_s6, %s1416_s9  }
 0x1b8 PF: > { %p1046_p3 = scmp.ge.s32.totalorder %s1405_s25, 2  ;;  %s794_s18 = sand.u32 1, %s1353_s12  }
 0x1b9   : > { %p2019_p9 = scmp.ne.s32.totalorder %s2003_s8, 0  ;;  %s795_s1 = scalar_lea.sflag [#allocation5], %s794_s18 }
 0x1bb   : > { %p1042_p4 = pnand %p1046_p3, %p2019_p9 }
 0x1bd   : > { %1348 = dma.done.wait (!%p1042_p4), %s795_s1, 4096  }
 0x1be   : > { %1350 = vsyncadd (!%p1042_p4), %s795_s1, 4294963200  ;;  %s22_s25 = sadd.s32 1, %s1405_s25   ;;  %s2021_s28 = sld [smem:[#allocation13_spill]] }
 0x1bf   : > { %p1909_p1 = scmp.ge.s32.totalorder %s22_s25, 11   ;;  %s2022_s14 = sld [smem:[#allocation24_spill]] }
 0x1c0   : > { %s2023_s3 = sld [smem:[#allocation14_spill]]  ;;  %s2024_s17 = sld [smem:[#allocation22_spill]] }
 0x1c1   : > { %s2025_s24 = sld [smem:[#allocation15_spill]]  ;;  %s2026_s20 = sld [smem:[#allocation23_spill]] }
 0x1c2   : > { %s2027_s21 = sld [smem:[#allocation18_spill]]  ;;  %s2028_s22 = sld [smem:[#allocation19_spill]] }
 0x1c3   : > { %s2029_s8 = sld [smem:[#allocation20_spill]]  ;;  %s2030_s5 = sld [smem:[#allocation21_spill]] }
 0x1c4   : > { %s2032_s12 = smov %s1357_s13  ;;  %s2033_s13 = smov %s2021_s28 }
 0x1c5   : > { %s2034_s15 = smov %s1369_s16  ;;  %s2036_s18 = smov %s1381_s19 }
 0x1c6   : > { %s2035_s16 = smov %s2023_s3  ;;  %21 = sbr.rel (!%p1909_p1) target bundleno = 15 (0xf), region = 109 }
 0x1c7   : > { %s2037_s19 = smov %s2025_s24 }
 0x1c9   : > { %s2038_s23 = smov %s2029_s8  ;;  %s2039_s24 = smov %s2030_s5 }
 0x1cd   :  { %800 = vsyncpa [#allocation4], 1 }
 0x1ce   :  { %802 = vsyncpa [#allocation4 + $0x1], 1 }
 0x1cf   :  { %803 = vsyncpa [#allocation7], 1 }
 0x1d0   :  { %805 = vsyncpa [#allocation7 + $0x1], 1 }
 0x1d1   :  { %806 = vsyncpa [#allocation5], 1 }
 0x1d2   :  { %808 = vsyncpa [#allocation5 + $0x1], 1 }

</bundles_post_ra>
